<compile_context>
chip_gen: v7x
topology: tpu7x:2x2x1
jax: 0.10.0
libtpu: 0.0.40
codegen_flags: <defaults>
</compile_context>

<pallas_src>
import math
import functools

import jax
import jax.numpy as jnp
from jax.experimental import pallas as pl
from jax.experimental.pallas import tpu as pltpu

# ----- deterministic module "parameters" ------------------------------------
B, H, S, D = 2, 2, 16, 32          # small synthetic shapes
DROPOUT_P = 0.1
INV_SCALE_FACTOR = math.sqrt(D)    # scores are divided by sqrt(D)

# approx reciprocal lowers only through Mosaic; use exact form elsewhere so the
# same script runs under CPU interpret checks.
_ON_TPU = jax.default_backend() == "tpu"


def _attn_kernel(q_ref, k_ref, v_ref, drop_ref, o_ref, *, scale, approx_recip):
    """One block of heads per grid step; full (G, S, *) tiles live in VMEM."""
    # Fold the softmax scale into Q once: a constant multiply on the (G,S,D)
    # tile instead of a divide on the (G,S,S) score tile.
    q = q_ref[...] * scale          # (G, S, D) f32
    k = k_ref[...]                  # (G, S, D) f32
    v = v_ref[...]                  # (G, S, D) f32

    # scores[g,i,j] = sum_d q[g,i,d] * k[g,j,d]
    # Contract on D directly (batched MXU matmul) — no k.T materialization.
    scores = jax.lax.dot_general(
        q, k,
        dimension_numbers=(((2,), (2,)), ((0,), (0,))),
        preferred_element_type=jnp.float32)          # (G, S, S)

    # Numerically stable softmax over the last dim.
    m = jnp.max(scores, axis=-1, keepdims=True)
    e = jnp.exp(scores - m)
    l = jnp.sum(e, axis=-1, keepdims=True)
    p = e * pl.reciprocal(l, approx=approx_recip)

    # Dropout: single fused multiply by precomputed {0, 1/(1-p)} scales.
    p = p * drop_ref[...]

    # output = p @ v  (batched MXU matmul, contraction on the key axis)
    out = jax.lax.dot_general(
        p, v,
        dimension_numbers=(((2,), (1,)), ((0,), (0,))),
        preferred_element_type=jnp.float32)          # (G, S, D)

    # One lane-dense-as-possible slab store per grid step.
    o_ref[...] = out.astype(o_ref.dtype)


def _num_grid_blocks(bh):
    # 2 blocks -> v7x can run one block per TensorCore ("parallel" semantics);
    # v5e/v6e see only 2 sequential steps instead of BH per-head steps.
    return 2 if (bh >= 2 and bh % 2 == 0) else 1


def attention_forward(query, key, value, drop_scale, *, inv_scale):
    """query/key/value: (BH, S, D) f32; drop_scale: (BH, S, S) f32 of
    {0, 1/(1-p)} values. Returns (BH, S, D) f32."""
    bh, s, d = query.shape
    nblk = _num_grid_blocks(bh)
    g = bh // nblk                          # heads per grid step

    kernel = functools.partial(
        _attn_kernel,
        scale=1.0 / inv_scale,              # reciprocal precomputed at trace time
        approx_recip=_ON_TPU,
    )

    return pl.pallas_call(
        kernel,
        out_shape=jax.ShapeDtypeStruct((bh, s, d), jnp.float32),
        grid=(nblk,),
        in_specs=[
            pl.BlockSpec((g, s, d), lambda i: (i, 0, 0)),   # Q
            pl.BlockSpec((g, s, d), lambda i: (i, 0, 0)),   # K
            pl.BlockSpec((g, s, d), lambda i: (i, 0, 0)),   # V
            pl.BlockSpec((g, s, s), lambda i: (i, 0, 0)),   # dropout scales
        ],
        out_specs=pl.BlockSpec((g, s, d), lambda i: (i, 0, 0)),
        compiler_params=pltpu.CompilerParams(
            # No cross-step state any more (mask precomputed), so the head
            # axis is safely parallel -> megacore sharding on v7x.
            dimension_semantics=("parallel",),
        ),
    )(query, key, value, drop_scale)


class PallasModel:
    """JAX/Pallas port of the PyTorch Model. Parameters are built in __init__."""

    def __init__(self, rng_key):
        kq, kk, kv, kd = jax.random.split(rng_key, 4)
        self.query = jax.random.normal(kq, (B * H, S, D), dtype=jnp.float32)
        self.key = jax.random.normal(kk, (B * H, S, D), dtype=jnp.float32)
        self.value = jax.random.normal(kv, (B * H, S, D), dtype=jnp.float32)
        self.inv_scale_factor = INV_SCALE_FACTOR
        self.dropout_p = DROPOUT_P
        self._drop_key = kd               # fresh dropout randomness per call

    def forward(self, x1, x2):
        # x1, x2 are unused by the reference module's forward pass as well.
        del x1, x2
        # Training-mode dropout semantics: fresh mask every invocation.
        self._drop_key, sub = jax.random.split(self._drop_key)
        if self.dropout_p > 0.0:
            keep = jax.random.bernoulli(sub, 1.0 - self.dropout_p, (B * H, S, S))
            drop_scale = jnp.where(
                keep, 1.0 / (1.0 - self.dropout_p), 0.0).astype(jnp.float32)
        else:
            drop_scale = jnp.ones((B * H, S, S), dtype=jnp.float32)
        # TODO(synk): for scaled-up S/D, cast Q/K/V to bf16 for the matmuls
        # (f32 accumulation) and switch to a flash-style KV-tiled structure.
        return attention_forward(self.query, self.key, self.value, drop_scale,
                                 inv_scale=self.inv_scale_factor)


if __name__ == "__main__":
    root = jax.random.PRNGKey(0)
    k_model, k_x1, k_x2 = jax.random.split(root, 3)

    model = PallasModel(k_model)

    # Unused inputs (match the PyTorch forward signature).
    x1 = jax.random.normal(k_x1, (B, H, S, D), dtype=jnp.float32)
    x2 = jax.random.normal(k_x2, (B, H, S, D), dtype=jnp.float32)

    out = model.forward(x1, x2)
    out = jax.block_until_ready(out)

    assert out.shape == (B * H, S, D), out.shape
    assert jnp.all(jnp.isfinite(out)), "non-finite values in output"
    print("KERNEL_OK")
</pallas_src>

<mosaic_0001>
module attributes {stable_mosaic.version = 11 : i64} {
  func.func @_attn_kernel(%arg0: i32, %arg1: memref<2x16x32xf32, #tpu.memory_space<vmem>>, %arg2: memref<2x16x32xf32, #tpu.memory_space<vmem>>, %arg3: memref<2x16x32xf32, #tpu.memory_space<vmem>>, %arg4: memref<2x16x16xf32, #tpu.memory_space<vmem>>, %arg5: memref<2x16x32xf32, #tpu.memory_space<vmem>>) attributes {dimension_semantics = [#tpu.dimension_semantics<parallel>], iteration_bounds = array<i64: 2>, scalar_prefetch = 0 : i64, scratch_operands = 0 : i64, tpu.core_type = #tpu.core_type<tc>, window_params = [{transform_indices = @transform_0, window_bounds = array<i64: 2, 16, 32>}, {transform_indices = @transform_1, window_bounds = array<i64: 2, 16, 32>}, {transform_indices = @transform_2, window_bounds = array<i64: 2, 16, 32>}, {transform_indices = @transform_3, window_bounds = array<i64: 2, 16, 16>}, {transform_indices = @transform_4, window_bounds = array<i64: 2, 16, 32>}]} {
    %c0 = arith.constant 0 : index
    %c0_0 = arith.constant 0 : index
    %c0_1 = arith.constant 0 : index
    %0 = vector.load %arg1[%c0, %c0_0, %c0_1] : memref<2x16x32xf32, #tpu.memory_space<vmem>>, vector<2x16x32xf32>
    %cst = arith.constant 0.176776692 : f32
    %1 = vector.broadcast %cst : f32 to vector<2x16x32xf32>
    %2 = arith.mulf %0, %1 : vector<2x16x32xf32>
    %c0_2 = arith.constant 0 : index
    %c0_3 = arith.constant 0 : index
    %c0_4 = arith.constant 0 : index
    %3 = vector.load %arg2[%c0_2, %c0_3, %c0_4] : memref<2x16x32xf32, #tpu.memory_space<vmem>>, vector<2x16x32xf32>
    %c0_5 = arith.constant 0 : index
    %c0_6 = arith.constant 0 : index
    %c0_7 = arith.constant 0 : index
    %4 = vector.load %arg3[%c0_5, %c0_6, %c0_7] : memref<2x16x32xf32, #tpu.memory_space<vmem>>, vector<2x16x32xf32>
    %cst_8 = arith.constant dense<0.000000e+00> : vector<2x16x16xf32>
    %5 = tpu.matmul %2, %3, %cst_8 {dimension_numbers = #tpu.dot_dimension_numbers<[2], [2], [1], [1], [0, 0, 0, 1, 1, 1], [0], [0]>} : vector<2x16x32xf32>, vector<2x16x32xf32>, vector<2x16x16xf32> -> vector<2x16x16xf32>
    %cst_9 = arith.constant dense<0xFF800000> : vector<2x16xf32>
    %6 = vector.multi_reduction <maximumf>, %5, %cst_9 [2] : vector<2x16x16xf32> to vector<2x16xf32>
    %7 = vector.shape_cast %6 : vector<2x16xf32> to vector<2x16x1xf32>
    %8 = vector.broadcast %7 : vector<2x16x1xf32> to vector<2x16x16xf32>
    %9 = arith.subf %5, %8 : vector<2x16x16xf32>
    %10 = math.exp %9 : vector<2x16x16xf32>
    %cst_10 = arith.constant dense<0.000000e+00> : vector<2x16xf32>
    %11 = vector.multi_reduction <add>, %10, %cst_10 [2] : vector<2x16x16xf32> to vector<2x16xf32>
    %12 = vector.shape_cast %11 : vector<2x16xf32> to vector<2x16x1xf32>
    %13 = tpu.reciprocal %12 : vector<2x16x1xf32> -> vector<2x16x1xf32>
    %14 = vector.broadcast %13 : vector<2x16x1xf32> to vector<2x16x16xf32>
    %15 = arith.mulf %10, %14 : vector<2x16x16xf32>
    %c0_11 = arith.constant 0 : index
    %c0_12 = arith.constant 0 : index
    %c0_13 = arith.constant 0 : index
    %16 = vector.load %arg4[%c0_11, %c0_12, %c0_13] : memref<2x16x16xf32, #tpu.memory_space<vmem>>, vector<2x16x16xf32>
    %17 = arith.mulf %15, %16 : vector<2x16x16xf32>
    %cst_14 = arith.constant dense<0.000000e+00> : vector<2x16x32xf32>
    %18 = tpu.matmul %17, %4, %cst_14 {dimension_numbers = #tpu.dot_dimension_numbers<[2], [1], [1], [2], [0, 0, 0, 1, 1, 2], [0], [0]>} : vector<2x16x16xf32>, vector<2x16x32xf32>, vector<2x16x32xf32> -> vector<2x16x32xf32>
    %c0_15 = arith.constant 0 : index
    %c0_16 = arith.constant 0 : index
    %c0_17 = arith.constant 0 : index
    %19 = vector.load %arg5[%c0_15, %c0_16, %c0_17] : memref<2x16x32xf32, #tpu.memory_space<vmem>>, vector<2x16x32xf32>
    tpu.vector_store %arg5[%c0_15, %c0_16, %c0_17], %18 {strides = array<i32>} : memref<2x16x32xf32, #tpu.memory_space<vmem>>, vector<2x16x32xf32>,
    return
  }
  func.func @transform_0(%arg0: i32) -> (i32, i32, i32) {
    %c0_i32 = arith.constant 0 : i32
    %c0_i32_0 = arith.constant 0 : i32
    %c0_i32_1 = arith.constant 0 : i32
    return %arg0, %c0_i32, %c0_i32_0 : i32, i32, i32
  }
  func.func @transform_1(%arg0: i32) -> (i32, i32, i32) {
    %c0_i32 = arith.constant 0 : i32
    %c0_i32_0 = arith.constant 0 : i32
    %c0_i32_1 = arith.constant 0 : i32
    return %arg0, %c0_i32, %c0_i32_0 : i32, i32, i32
  }
  func.func @transform_2(%arg0: i32) -> (i32, i32, i32) {
    %c0_i32 = arith.constant 0 : i32
    %c0_i32_0 = arith.constant 0 : i32
    %c0_i32_1 = arith.constant 0 : i32
    return %arg0, %c0_i32, %c0_i32_0 : i32, i32, i32
  }
  func.func @transform_3(%arg0: i32) -> (i32, i32, i32) {
    %c0_i32 = arith.constant 0 : i32
    %c0_i32_0 = arith.constant 0 : i32
    %c0_i32_1 = arith.constant 0 : i32
    return %arg0, %c0_i32, %c0_i32_0 : i32, i32, i32
  }
  func.func @transform_4(%arg0: i32) -> (i32, i32, i32) {
    %c0_i32 = arith.constant 0 : i32
    %c0_i32_0 = arith.constant 0 : i32
    %c0_i32_1 = arith.constant 0 : i32
    return %arg0, %c0_i32, %c0_i32_0 : i32, i32, i32
  }
}

</mosaic_0001>

<bundles_post_ra>
// kernel: tpu_custom_call.1
= control target key start
LH: loop header
LB: loop body
LE: loop exit
PB: predicated region body
PF: predicated region fallthrough
CT: control target
= control target key end

     0   :  { %s1676_s0 = inlined_call_operand.hbm [shape: f32[4,16,32], index: 0, kind: input, shape index: {}]   ;;  %s1677_s1 = inlined_call_operand.hbm [shape: f32[4,16,32], index: 1, kind: input, shape index: {}]   ;;  %s1678_s2 = inlined_call_operand.hbm [shape: f32[4,16,32], index: 2, kind: input, shape index: {}]   ;;  %s1679_s3 = inlined_call_operand.hbm [shape: f32[4,16,16], index: 3, kind: input, shape index: {}]   ;;  %s1680_s4 = inlined_call_operand.hbm [shape: f32[4,16,32], index: 4, kind: output, shape index: {}]  }
   0x1   :  { %1687 = sst [smem:[#allocation16_spill]] %s1676_s0 }
   0x2   :  { %1688 = sst [smem:[#allocation17_spill]] %s1677_s1 }
   0x3   :  { %9 = vsyncpa [#allocation3], 0 }
   0x4   :  { %11 = vsyncpa [#allocation3 + $0x1], 0 }
   0x5   :  { %12 = vsyncpa [#allocation6], 0 }
   0x6   :  { %14 = vsyncpa [#allocation6 + $0x1], 0 }
   0x7   :  { %15 = vsyncpa [#allocation9], 0 }
   0x8   :  { %17 = vsyncpa [#allocation9 + $0x1], 0 }
   0x9   :  { %18 = vsyncpa [#allocation4], 0 }
   0xa   :  { %20 = vsyncpa [#allocation4 + $0x1], 0  ;;  %s1334_s15 = smov 0   ;;  %s1336_s16 = smov 0  }
   0xb   :  { %s1338_s17 = smov 0   ;;  %s1340_s18 = smov 0  }
   0xc LB: > { %s1355_s19 = sadd.s32 4294967295, %s1298_s18   ;;  %s906_s20 = sadd.s32 4294967294, %s1298_s18   ;;  %s1298_s18 = sphi %s1340_s18, %s1710_s18   ;;  %s1294_s17 = sphi %s1338_s17, %s1709_s17   ;;  %s1290_s16 = sphi %s1336_s16, %s1708_s16   ;;  %s1286_s15 = sphi %s1334_s15, %s1707_s15  }
   0xd   : > { %s1359_s21 = sadd.s32 1, %s1298_s18   ;;  %s33_s22 = sadd.s32 1, %s1294_s17 }
   0xe   : > { %s30_s23 = ssub.s32 %s1298_s18, %s1359_s21  ;;  %p40_p0 = scmp.ne.s32.totalorder %s1294_s17, %s1290_s16 }
   0xf   : > { %p31_p1 = scmp.eq.s32.totalorder %s30_s23, 0  ;;  %p41_p2 = scmp.eq.s32.totalorder %s1298_s18, 0 }
  0x10   : > { %p46_p3 = scmp.ne.s32.totalorder %s1290_s16, %s1286_s15  ;;  %p47_p4 = scmp.eq.s32.totalorder %s1355_s19, 0 }
  0x11   : > { %s1371_s24 = scalar_select %p31_p1, %s1294_s17, %s33_s22  }
  0x12   : > { %p42_p5 = por %p41_p2, %p40_p0  ;;  %p1373_p6 = por %p47_p4, %p46_p3 }
  0x13   : > { %1689 = sst [smem:[#allocation15_spill]] %s1371_s24  ;;  %p148_p7 = scmp.eq.s32.totalorder %s1355_s19, 1 }
  0x14   : > { %s1690_s25 = scalar_select %p1373_p6, 1, 0 }
  0x15   : > { %p154_p8 = scmp.eq.s32.totalorder %s906_s20, 1  ;;  %p1050_p10 = scmp.lt.s32.totalorder %s1298_s18, 2 }
  0x16   : > { %p1380_p11 = por %p148_p7, %p40_p0  ;;  %s1389_s28 = sand.u32 1, %s1294_s17  }
  0x17   : > { %p1384_p12 = por %p154_p8, %p46_p3  ;;  %s1392_s29 = sshll.u32 %s1298_s18, 9 }
  0x18   : > { %s1691_s26 = scalar_select %p1380_p11, 1, 0 }
  0x19   : > { %s1692_s27 = scalar_select %p1384_p12, 1, 0 }
  0x1a   : > { %s1395_s30 = sshll.u32 %s1389_s28, 5  ;;  %p1397_p13 = pnand %p1050_p10, %p42_p5 }
  0x1b   : > { %s196_s6 = sand.u32 1, %s1298_s18   ;;  %s1694_s1 = sld [smem:[#allocation17_spill]] }
  0x1c   : > { %s200_s10 = scalar_lea.vmem [#allocation5], %s1395_s30  ;;  %s1412_s12 = scalar_lea.sflag [#allocation6], %s196_s6 }
  0x1d   : > { %s208_s11 = sshll.u32 %s200_s10, 4  ;;  %p1418_p2 = pneg %p1397_p13  ;;  %s1409_s11 = int_to_ptr.vmem [resolvable:$true] %s208_s11 }
  0x21   : > { %s1406_s9 = scalar_lea.hbm %s1694_s1, %s1392_s29  ;;  %s1109_s23 = scalar_lea.hbm %s1694_s1, 1024 }
  0x22   : > { %s1104_s13 = scalar_lea.hbm %s1406_s9, 512  ;;  %p1110_p5 = scmp.lt.u32.totalorder %s1406_s9, %s1694_s1 }
  0x23   : > { %p1105_p1 = scmp.ne.s32.totalorder %s1406_s9, %s1104_s13  ;;  %p1111_p7 = scmp.lt.u32.totalorder %s1109_s23, %s1104_s13 }
  0x24   : > { %p1113_p10 = scmp.lt.u32.totalorder %s1104_s13, %s1406_s9 }
  0x25   : > { %p1107_p3 = pnand %p1418_p2, %p1105_p1  ;;  %p1112_p8 = por %p1111_p7, %p1110_p5 }
  0x27   : > { %p1108_p4 = pneg %p1107_p3  ;;  %p1114_p9 = por %p1113_p10, %p1112_p8 }
  0x29   : > { %p1115_p0 = pnand %p1114_p9, %p1108_p4 }
  0x2b   : > { %1118 = shalt.err (!%p1115_p0)
}
  0x2c   : > { %s1119_s6 = scalar_lea.vmem %s1409_s11, 512  ;;  %s1300_s10 = smov [#allocation5]  }
  0x2d   : > { %p1120_p1 = scmp.ne.s32.totalorder %s1409_s11, %s1119_s6  ;;  %s1124_s20 = sshll.u32 %s1300_s10, 4  ;;  %s1125_s20 = int_to_ptr.vmem [resolvable:$false] %s1124_s20 }
  0x2e   : > { %s1126_s22 = scalar_lea.vmem %s1125_s20, 1024  ;;  %p1127_p11 = scmp.lt.s32.totalorder %s1409_s11, %s1125_s20 }
  0x2f   : > { %p1122_p3 = pnand %p1120_p1, %p1418_p2  ;;  %p1128_p6 = scmp.lt.s32.totalorder %s1126_s22, %s1119_s6 }
  0x31   : > { %p1123_p12 = pneg %p1122_p3  ;;  %p1129_p5 = por %p1128_p6, %p1127_p11 }
  0x33   : > { %p1130_p7 = pnand %p1129_p5, %p1123_p12 }
  0x35   : > { %1133 = shalt.err (!%p1130_p7)
}
  0x36   : > { %s1683_s13 = smov 128   ;;  %s1685_s23 = smov 8  }
  0x37   : > { %1039 = dma.hbm_to_vmem [thread:$0]  (!%p1397_p13), %s1406_s9, 512, %s1409_s11, %s1412_s12, %s1683_s13, %s1683_s13, %s1685_s23  }
  0x38   : > { %p260_p6 = scmp.lt.s32.totalorder %s1298_s18, 3  ;;  %s1696_s0 = sld [smem:[#allocation16_spill]] }
  0x39   : > { %p1697_p9 = scmp.ge.s32.totalorder %s1298_s18, 1  ;;  %s178_s20 = scalar_lea.vmem [#allocation2], %s1395_s30 }
  0x3a   : > { %s186_s22 = sshll.u32 %s178_s20, 4  ;;  %s175_s9 = scalar_lea.sflag [#allocation3], %s1389_s28  ;;  %s1459_s22 = int_to_ptr.vmem [resolvable:$true] %s186_s22 }
  0x3b   : > { %p1454_p11 = pnand %p1697_p9, %p260_p6 }
  0x3d   : > { %s1698_s10 = scalar_select %p1454_p11, 1, 0 }
  0x3e   : > { %s1450_s6 = scalar_lea.hbm %s1696_s0, %s1392_s29  ;;  %s1139_s13 = scalar_lea.hbm %s1696_s0, 1024 }
  0x3f   : > { %s1134_s11 = scalar_lea.hbm %s1450_s6, 512  ;;  %p1140_p8 = scmp.lt.u32.totalorder %s1450_s6, %s1696_s0 }
  0x40   : > { %p1135_p12 = scmp.ne.s32.totalorder %s1450_s6, %s1134_s11  ;;  %p1141_p10 = scmp.lt.u32.totalorder %s1139_s13, %s1134_s11 }
  0x41   : > { %p1143_p3 = scmp.lt.u32.totalorder %s1134_s11, %s1450_s6 }
  0x42   : > { %p1137_p0 = pnand %p1135_p12, %p1418_p2  ;;  %p1142_p1 = por %p1141_p10, %p1140_p8 }
  0x44   : > { %p1138_p4 = pneg %p1137_p0  ;;  %p1144_p5 = por %p1143_p3, %p1142_p1 }
  0x46   : > { %p1145_p7 = pnand %p1144_p5, %p1138_p4 }
  0x48   : > { %1148 = shalt.err (!%p1145_p7)
}
  0x49   : > { %s1149_s20 = scalar_lea.vmem %s1459_s22, 512  ;;  %s1303_s7 = smov [#allocation2]  }
  0x4a   : > { %p1150_p6 = scmp.ne.s32.totalorder %s1459_s22, %s1149_s20  ;;  %s1154_s8 = sshll.u32 %s1303_s7, 4  ;;  %s1155_s8 = int_to_ptr.vmem [resolvable:$false] %s1154_s8 }
  0x4b   : > { %s1156_s1 = scalar_lea.vmem %s1155_s8, 1024  ;;  %p1157_p0 = scmp.lt.s32.totalorder %s1459_s22, %s1155_s8 }
  0x4c   : > { %p1152_p9 = pnand %p1150_p6, %p1418_p2  ;;  %p1158_p11 = scmp.lt.s32.totalorder %s1156_s1, %s1149_s20 }
  0x4e   : > { %p1153_p12 = pneg %p1152_p9  ;;  %p1159_p8 = por %p1158_p11, %p1157_p0 }
  0x50   : > { %p1160_p10 = pnand %p1159_p8, %p1153_p12 }
  0x52   : > { %1163 = shalt.err (!%p1160_p10)
}
  0x53   : > { %s1699_s13 = smov 8   ;;  %s1700_s23 = smov 128  }
  0x54   : > { %1036 = dma.hbm_to_vmem [thread:$0]  (!%p1397_p13), %s1450_s6, 512, %s1459_s22, %s175_s9, %s1700_s23, %s1700_s23, %s1699_s13  }
  0x55   : > { %s1492_s20 = scalar_lea.hbm %s1678_s2, %s1392_s29  ;;  %s222_s8 = scalar_lea.vmem [#allocation7], %s1395_s30 }
  0x56   : > { %s230_s1 = sshll.u32 %s222_s8, 4  ;;  %s1164_s0 = scalar_lea.hbm %s1492_s20, 512  ;;  %s1495_s1 = int_to_ptr.vmem [resolvable:$true] %s230_s1 }
  0x57   : > { %p1165_p11 = scmp.ne.s32.totalorder %s1492_s20, %s1164_s0  ;;  %s1169_s22 = scalar_lea.hbm %s1678_s2, 1024 }
  0x58   : > { %p1170_p3 = scmp.lt.u32.totalorder %s1492_s20, %s1678_s2  ;;  %p1171_p5 = scmp.lt.u32.totalorder %s1169_s22, %s1164_s0 }
  0x59   : > { %p1167_p4 = pnand %p1165_p11, %p1418_p2  ;;  %p1173_p6 = scmp.lt.u32.totalorder %s1164_s0, %s1492_s20 }
  0x5a   : > { %p1172_p7 = por %p1171_p5, %p1170_p3 }
  0x5b   : > { %p1168_p1 = pneg %p1167_p4 }
  0x5c   : > { %p1174_p9 = por %p1173_p6, %p1172_p7 }
  0x5e   : > { %p1175_p12 = pnand %p1174_p9, %p1168_p1 }
  0x60   : > { %1178 = shalt.err (!%p1175_p12)
}
  0x61   : > { %s1179_s7 = scalar_lea.vmem %s1495_s1, 512  ;;  %s1304_s24 = smov [#allocation7]  }
  0x62   : > { %p1180_p0 = scmp.ne.s32.totalorder %s1495_s1, %s1179_s7  ;;  %s1184_s8 = sshll.u32 %s1304_s24, 4  ;;  %s1185_s8 = int_to_ptr.vmem [resolvable:$false] %s1184_s8 }
  0x63   : > { %s1186_s6 = scalar_lea.vmem %s1185_s8, 1024  ;;  %p1187_p11 = scmp.lt.s32.totalorder %s1495_s1, %s1185_s8 }
  0x64   : > { %p1182_p8 = pnand %p1180_p0, %p1418_p2  ;;  %p1188_p4 = scmp.lt.s32.totalorder %s1186_s6, %s1179_s7 }
  0x66   : > { %p1183_p10 = pneg %p1182_p8  ;;  %p1189_p3 = por %p1188_p4, %p1187_p11 }
  0x68   : > { %p1190_p5 = pnand %p1189_p3, %p1183_p10 }
  0x6a   : > { %1193 = shalt.err (!%p1190_p5)
}
  0x6b   : > { %1042 = dma.hbm_to_vmem [thread:$0]  (!%p1397_p13), %s1492_s20, 512, %s1495_s1, %s1412_s12, %s1700_s23, %s1700_s23, %s1699_s13  }
  0x6c   : > { %s1526_s9 = scalar_lea.hbm %s1679_s3, %s1392_s29  ;;  %s244_s11 = scalar_lea.vmem [#allocation8], %s1395_s30 }
  0x6d   : > { %s252_s7 = sshll.u32 %s244_s11, 4  ;;  %s241_s24 = scalar_lea.sflag [#allocation9], %s1389_s28  ;;  %s1529_s7 = int_to_ptr.vmem [resolvable:$true] %s252_s7 }
  0x6e   : > { %s1194_s8 = scalar_lea.hbm %s1526_s9, 512  ;;  %s1199_s1 = scalar_lea.hbm %s1679_s3, 1024 }
  0x6f   : > { %p1195_p1 = scmp.ne.s32.totalorder %s1526_s9, %s1194_s8  ;;  %p1200_p9 = scmp.lt.u32.totalorder %s1526_s9, %s1679_s3 }
  0x70   : > { %p1201_p12 = scmp.lt.u32.totalorder %s1199_s1, %s1194_s8  ;;  %p1203_p8 = scmp.lt.u32.totalorder %s1194_s8, %s1526_s9 }
  0x71   : > { %p1197_p7 = pnand %p1195_p1, %p1418_p2 }
  0x72   : > { %p1202_p0 = por %p1201_p12, %p1200_p9 }
  0x73   : > { %p1198_p6 = pneg %p1197_p7 }
  0x74   : > { %p1204_p10 = por %p1203_p8, %p1202_p0 }
  0x76   : > { %p1205_p11 = pnand %p1204_p10, %p1198_p6 }
  0x78   : > { %1208 = shalt.err (!%p1205_p11)
}
  0x79   : > { %s1209_s30 = scalar_lea.vmem %s1529_s7, 512  ;;  %s1305_s0 = smov [#allocation8]  }
  0x7a   : > { %p1210_p4 = scmp.ne.s32.totalorder %s1529_s7, %s1209_s30  ;;  %s1214_s22 = sshll.u32 %s1305_s0, 4  ;;  %s1215_s22 = int_to_ptr.vmem [resolvable:$false] %s1214_s22 }
  0x7b   : > { %s1216_s11 = scalar_lea.vmem %s1215_s22, 1024  ;;  %p1217_p1 = scmp.lt.s32.totalorder %s1529_s7, %s1215_s22 }
  0x7c   : > { %p1212_p3 = pnand %p1210_p4, %p1418_p2  ;;  %p1218_p7 = scmp.lt.s32.totalorder %s1216_s11, %s1209_s30 }
  0x7e   : > { %p1213_p5 = pneg %p1212_p3  ;;  %p1219_p9 = por %p1218_p7, %p1217_p1 }
  0x80   : > { %p1220_p12 = pnand %p1219_p9, %p1213_p5 }
  0x82   : > { %1223 = shalt.err (!%p1220_p12)
}
  0x83   : > { %1045 = dma.hbm_to_vmem [thread:$0]  (!%p1397_p13), %s1526_s9, 512, %s1529_s7, %s241_s24, %s1700_s23, %s1700_s23, %s1699_s13  }
  0x84   : > { %p1701_p2 = scmp.ne.s32.totalorder %s1698_s10, 0 }
  0x85   : > { %s1561_s14 = sand.u32 (!%p1701_p2), 1, %s1290_s16   ;;  %p1702_p6 = scmp.ne.s32.totalorder (!%p1701_p2), %s1690_s25, 0 }
  0x86   : > { %264 = sbr.rel (%p1701_p2) target bundleno = 924 (0x39c), region = 36  ;;  %s1564_s8 = sshll.u32 (!%p1701_p2), %s1561_s14, 5 }
  0x87   : > { %s267_s5 = scalar_lea.sflag (!%p1701_p2), [#allocation3], %s1561_s14  ;;  %s1568_s12 = scalar_lea.vmem (!%p1701_p2), [#allocation2], %s1564_s8 }
  0x8d   : > { %1269 = dma.done.wait (%p1702_p6), %s267_s5, 512  }
  0x8e   : > { %1271 = vsyncadd (%p1702_p6), %s267_s5, 4294966784  ;;  %s275_s28 = sand.u32 1, %s1355_s19   ;;  %s279_s13 = scalar_lea.vmem [#allocation5], %s1564_s8 }
  0x8f   : > { %s276_s10 = scalar_lea.sflag [#allocation6], %s275_s28 }
  0x90   : > { %1273 = dma.done.wait (%p1702_p6), %s276_s10, 1024  }
  0x91   : > { %1275 = vsyncadd (%p1702_p6), %s276_s10, 4294966272  ;;  %s1581_s23 = scalar_lea.vmem [#allocation7], %s1564_s8  ;;  %s294_s9 = scalar_lea.sflag [#allocation9], %s1561_s14 }
  0x92   : > { %s1585_s7 = scalar_lea.vmem [#allocation8], %s1564_s8 }
  0x93   : > { %1277 = dma.done.wait (%p1702_p6), %s294_s9, 512  }
  0x94   : > { %1279 = vsyncadd (%p1702_p6), %s294_s9, 4294966784  ;;  %vm358_vm0 = vcmask 261120   ;;  %v350_v0 = vld [vmem:[%s279_s13] sm:$0xff]  ;;  %v351_v1 = vld [vmem:[%s279_s13 + $0x8] sm:$0xff]  ;;  %vm533_vm2 = vcmask 130048   ;;  %s336_s25 = scalar_lea.vmem [#allocation10], %s1564_s8 }
  0x95   : > { %vm1004_vm1 = vmpackc.low %vm358_vm0, %vm358_vm0  ;;  %v352_v2 = vld [vmem:[%s279_s13 + $0x10] sm:$0xff]  ;;  %v1003_v3 = vpack.c.bf16 %v351_v1, %v350_v0  ;;  %v353_v4 = vld [vmem:[%s279_s13 + $0x18] sm:$0xff]  ;;  %s767_s24 = sshll.u32 %s336_s25, 4  ;;  %s958_s20 = sshll.u32 %s1355_s19, 9  ;;  %s1624_s24 = int_to_ptr.vmem [resolvable:$true] %s767_s24 }
  0x96   : > { %v342_v5 = vld [vmem:[%s1568_s12] sm:$0xff]  ;;  %v1009_v6 = vpack.c.bf16 %v353_v4, %v352_v2  ;;  %v344_v8 = vld [vmem:[%s1568_s12 + $0x10] sm:$0xff]  ;;  %v343_v10 = vld [vmem:[%s1568_s12 + $0x8] sm:$0xff]  ;;  %s1630_s6 = scalar_lea.hbm %s1680_s4, %s958_s20  ;;  %s753_s19 = scalar_lea.sflag [#allocation4], %s1561_s14 }
  0x97   : > { %v346_v7 = vmul.f32 0.17677669, %v342_v5  ;;  %1005 = vmatprep.subr.msk.bf16.mxu0 %vm1004_vm1, %v1003_v3  ;;  %v348_v9 = vmul.f32 0.17677669, %v344_v8  ;;  %v345_v11 = vld [vmem:[%s1568_s12 + $0x18] sm:$0xff]  ;;  %v354_v42 = vld [vmem:[%s1581_s23] sm:$0xff] }
  0x98   : > { %1008 = vmatpush3.bf16.xpose.msk.msra.mxu0 %vm1004_vm1, %v1003_v3  ;;  %1011 = vmatprep.subr.msk.bf16.mxu1 %vm1004_vm1, %v1009_v6  ;;  %v347_v12 = vmul.f32 0.17677669, %v343_v10  ;;  %v349_v13 = vmul.f32 0.17677669, %v345_v11  ;;  %v355_v43 = vld [vmem:[%s1581_s23 + $0x8] sm:$0xff]  ;;  %v356_v45 = vld [vmem:[%s1581_s23 + $0x10] sm:$0xff] }
  0x99   : > { %1014 = vmatpush3.bf16.xpose.msk.msra.mxu1 %vm1004_vm1, %v1009_v6  ;;  %979 = vmatprep.mubr.msk.f32.mxu0 %vm358_vm0, %v346_v7  ;;  %v1015_v44 = vpack.c.bf16 %v355_v43, %v354_v42  ;;  %v357_v46 = vld [vmem:[%s1581_s23 + $0x18] sm:$0xff]  ;;  %v578_v53 = vld [vmem:[%s1585_s7] sm:$0xff]  ;;  %v580_v57 = vld [vmem:[%s1585_s7 + $0x10] sm:$0xff]  ;;  %s1224_s30 = scalar_lea.vmem %s1624_s24, 512  ;;  %p1703_p0 = scmp.ne.s32.totalorder %s1691_s26, 0 }
  0x9a   : > { %986 = vmatprep.mubr.msk.f32.mxu1 %vm358_vm0, %v348_v9  ;;  %v1019_v47 = vpack.c.bf16 %v357_v46, %v356_v45  ;;  %v579_v59 = vld [vmem:[%s1585_s7 + $0x8] sm:$0xff]  ;;  %v581_v1 = vld [vmem:[%s1585_s7 + $0x18] sm:$0xff]  ;;  %p1225_p13 = scmp.ne.s32.totalorder %s1624_s24, %s1224_s30  ;;  %s1306_s0 = smov [#allocation10]  }
  0x9b   : > { %1016 = vmatprep.subr.bf16.mxu0 %v1015_v44  ;;  %s1228_s22 = sshll.u32 %s1306_s0, 4  ;;  %s1229_s22 = int_to_ptr.vmem [resolvable:$false] %s1228_s22 }
  0x9c   : > { %1020 = vmatprep.subr.bf16.mxu1 %v1019_v47  ;;  %p1226_p8 = pnand %p1225_p13, %p1703_p0  ;;  %s1230_s11 = scalar_lea.vmem %s1229_s22, 1024 }
  0x9d   : > { %p1231_p11 = scmp.lt.s32.totalorder %s1624_s24, %s1229_s22  ;;  %p1232_p4 = scmp.lt.s32.totalorder %s1230_s11, %s1224_s30 }
  0x9e   : > { %p1227_p10 = pneg %p1226_p8 }
  0x9f   : > { %980 = vmatmul.mubr.msk.f32.vlgmr.msra.gmra.mrb[0].mxu0 %vm358_vm0, %v347_v12  ;;  %p1233_p3 = por %p1232_p4, %p1231_p11 }
  0xa0   : > { %987 = vmatmul.mubr.msk.f32.vlgmr.msra.gmra.mrb[0].mxu1 %vm358_vm0, %v349_v13  ;;  %1018 = vmatpush3.bf16.msra.mxu0 %v1015_v44 }
  0xa1   : > { %1022 = vmatpush3.bf16.msra.mxu1 %v1019_v47  ;;  %p1234_p5 = pnand %p1233_p3, %p1227_p10 }
 0x172   : > { %v981_v14 = vpop.f32.mrb[0].mxu0 }
 0x173   : > { %v437_v15 = vpop.f32.mrb[1].mxu0  ;;  %v537_v16 = vsel %vm533_vm2, %v981_v14, -inf  ;;  %v988_v17 = vpop.f32.mrb[0].mxu1 }
 0x174   : > { %538 = vmax.xlane.f32.xlu1 %v537_v16  ;;  %v534_v18 = vsel %vm533_vm2, %v437_v15, -inf  ;;  %v524_v19 = vpop.f32.mrb[1].mxu1  ;;  %v543_v20 = vsel %vm533_vm2, %v988_v17, -inf }
 0x175   : > { %535 = vmax.xlane.f32.xlu0 %v534_v18  ;;  %v540_v21 = vsel %vm533_vm2, %v524_v19, -inf }
 0x178   : > { %544 = vmax.xlane.f32.xlu1 %v543_v20 }
 0x179   : > { %541 = vmax.xlane.f32.xlu0 %v540_v21 }
 0x201   : > { %v539_v22 = vpop.xlane.xlu1 %538 }
 0x202   : > { %v547_v23 = vsub.f32 %v981_v14, %v539_v22  ;;  %v536_v24 = vpop.xlane.xlu0 %535 }
 0x203   : > { %v546_v25 = vsub.f32 %v437_v15, %v536_v24 }
 0x204   : > { %v552_v26 = vmul.f32 1.442695, %v547_v23 }
 0x205   : > { %v550_v27 = vmul.f32 1.442695, %v546_v25  ;;  %v545_v28 = vpop.xlane.xlu1 %544 }
 0x206   : > { %v549_v29 = vsub.f32 %v988_v17, %v545_v28  ;;  %v542_v30 = vpop.xlane.xlu0 %541 }
 0x207   : > { %1088 = vpow2.f32 %v550_v27  ;;  %v548_v31 = vsub.f32 %v524_v19, %v542_v30 }
 0x208   : > { %1090 = vpow2.f32 %v552_v26  ;;  %v556_v32 = vmul.f32 1.442695, %v549_v29 }
 0x209   : > { %v554_v33 = vmul.f32 1.442695, %v548_v31 }
 0x20b   : > { %1092 = vpow2.f32 %v554_v33 }
 0x20c   : > { %1094 = vpow2.f32 %v556_v32 }
 0x211   : > { %v1089_v34 = vpop.eup %1088 }
 0x212   : > { %v558_v35 = vsel %vm533_vm2, %v1089_v34, 0.0  ;;  %v1091_v36 = vpop.eup %1090 }
 0x213   : > { %559 = vadd.xlane.f32.xlu0 %v558_v35  ;;  %v561_v38 = vsel %vm533_vm2, %v1091_v36, 0.0 }
 0x215   : > { %v1093_v37 = vpop.eup %1092 }
 0x216   : > { %v564_v39 = vsel %vm533_vm2, %v1093_v37, 0.0  ;;  %v1095_v40 = vpop.eup %1094 }
 0x217   : > { %562 = vadd.xlane.f32.xlu0 %v561_v38  ;;  %565 = vadd.xlane.f32.xlu1 %v564_v39  ;;  %v567_v41 = vsel %vm533_vm2, %v1095_v40, 0.0 }
 0x21b   : > { %568 = vadd.xlane.f32.xlu1 %v567_v41 }
 0x2a0   : > { %v560_v48 = vpop.xlane.xlu0 %559 }
 0x2a1   : > { %1096 = vrcp.f32 %v560_v48 }
 0x2a4   : > { %v566_v49 = vpop.xlane.xlu1 %565  ;;  %v563_v50 = vpop.xlane.xlu0 %562 }
 0x2a5   : > { %1098 = vrcp.f32 %v566_v49 }
 0x2a6   : > { %1100 = vrcp.f32 %v563_v50 }
 0x2a8   : > { %v569_v51 = vpop.xlane.xlu1 %568 }
 0x2a9   : > { %1102 = vrcp.f32 %v569_v51 }
 0x2ab   : > { %v1097_v52 = vpop.eup %1096 }
 0x2ac   : > { %v574_v54 = vmul.f32 %v1097_v52, %v1089_v34 }
 0x2ae   : > { %v582_v55 = vmul.f32 %v578_v53, %v574_v54 }
 0x2af   : > { %v1099_v56 = vpop.eup %1098 }
 0x2b0   : > { %v1101_v58 = vpop.eup %1100  ;;  %993 = vmatprep.mubr.msk.f32.mxu0 %vm533_vm2, %v582_v55  ;;  %v576_v60 = vmul.f32 %v1099_v56, %v1093_v37 }
 0x2b1   : > { %v575_v61 = vmul.f32 %v1101_v58, %v1091_v36 }
 0x2b2   : > { %v584_v62 = vmul.f32 %v580_v57, %v576_v60 }
 0x2b3   : > { %v1103_v63 = vpop.eup %1102  ;;  %v583_v0 = vmul.f32 %v579_v59, %v575_v61 }
 0x2b4   : > { %v577_v2 = vmul.f32 %v1103_v63, %v1095_v40  ;;  %1000 = vmatprep.mubr.msk.f32.mxu1 %vm533_vm2, %v584_v62 }
 0x2b5   : > { %994 = vmatmul.mubr.msk.f32.vlgmr.msra.gmra.mrb[2].mxu0 %vm533_vm2, %v583_v0 }
 0x2b6   : > { %v585_v3 = vmul.f32 %v581_v1, %v577_v2 }
 0x2b8   : > { %1001 = vmatmul.mubr.msk.f32.vlgmr.msra.gmra.mrb[2].mxu1 %vm533_vm2, %v585_v3 }
 0x388   : > { %v995_v4 = vpop.f32.mrb[2].mxu0 }
 0x389   : > { %749 = vst.msk [vmem:[%s336_s25 + $0x8] sm:$0xff] %vm358_vm0, %v995_v4  ;;  %v658_v5 = vpop.f32.mrb[3].mxu0 }
 0x38a   : > { %748 = vst.msk [vmem:[%s336_s25] sm:$0xff] %vm358_vm0, %v658_v5 }
 0x38b   : > { %v1002_v6 = vpop.f32.mrb[2].mxu1 }
 0x38c   : > { %751 = vst.msk [vmem:[%s336_s25 + $0x18] sm:$0xff] %vm358_vm0, %v1002_v6  ;;  %v739_v7 = vpop.f32.mrb[3].mxu1 }
 0x38d   : > { %750 = vst.msk [vmem:[%s336_s25 + $0x10] sm:$0xff] %vm358_vm0, %v739_v7 }
 0x38e   : > { %1237 = shalt.err (!%p1234_p5)
}
 0x38f   : > { %s1238_s8 = scalar_lea.hbm %s1630_s6, 512  ;;  %s1242_s28 = scalar_lea.hbm %s1680_s4, 1024 }
 0x390   : > { %p1239_p1 = scmp.ne.s32.totalorder %s1630_s6, %s1238_s8  ;;  %p1243_p12 = scmp.lt.u32.totalorder %s1630_s6, %s1680_s4 }
 0x391   : > { %p1244_p2 = scmp.lt.u32.totalorder %s1242_s28, %s1238_s8  ;;  %p1246_p13 = scmp.lt.u32.totalorder %s1238_s8, %s1630_s6 }
 0x392   : > { %p1240_p7 = pnand %p1239_p1, %p1703_p0 }
 0x393   : > { %p1245_p6 = por %p1244_p2, %p1243_p12 }
 0x394   : > { %p1241_p9 = pneg %p1240_p7 }
 0x395   : > { %p1247_p8 = por %p1246_p13, %p1245_p6 }
 0x397   : > { %p1248_p10 = pnand %p1247_p8, %p1241_p9 }
 0x399   : > { %1251 = shalt.err (!%p1248_p10)
}
 0x39a   : > { %s1307_s23 = smov 128   ;;  %s1308_s9 = smov 8  }
 0x39b   : > { %1031 = dma.vmem_to_hbm [thread:$0]  (%p1703_p0), %s1624_s24, 512, %s1630_s6, %s753_s19, %s1307_s23, %s1307_s23, %s1308_s9  }
 0x39c PF: > { %s782_s7 = sand.u32 1, %s1286_s15   ;;  %p1704_p11 = scmp.ne.s32.totalorder %s1692_s27, 0 }
 0x39d   : > { %p1705_p4 = scmp.ge.s32.totalorder %s1298_s18, 2  ;;  %s783_s25 = scalar_lea.sflag [#allocation4], %s782_s7 }
 0x39f   : > { %p1047_p3 = pnand %p1705_p4, %p1704_p11 }
 0x3a1   : > { %1281 = dma.done.wait (!%p1047_p3), %s783_s25, 512  }
 0x3a2   : > { %1283 = vsyncadd (!%p1047_p3), %s783_s25, 4294966784  ;;  %s1706_s20 = sld [smem:[#allocation15_spill]]  ;;  %p23_p5 = scmp.ge.s32.totalorder %s1359_s21, 4  }
 0x3a3   : > { %s1707_s15 = smov %s1290_s16  ;;  %s1708_s16 = smov %s1294_s17 }
 0x3a4   : > { %s1710_s18 = smov %s1359_s21  ;;  %25 = sbr.rel (!%p23_p5) target bundleno = 12 (0xc), region = 118 }
 0x3a8   : > { %s1709_s17 = smov %s1706_s20 }
 0x3ab   :  { %788 = vsyncpa [#allocation3], 1 }
 0x3ac   :  { %790 = vsyncpa [#allocation3 + $0x1], 1 }
 0x3ad   :  { %791 = vsyncpa [#allocation6], 1 }
 0x3ae   :  { %793 = vsyncpa [#allocation6 + $0x1], 1 }
 0x3af   :  { %794 = vsyncpa [#allocation9], 1 }
 0x3b0   :  { %796 = vsyncpa [#allocation9 + $0x1], 1 }
 0x3b1   :  { %797 = vsyncpa [#allocation4], 1 }
 0x3b2   :  { %799 = vsyncpa [#allocation4 + $0x1], 1 }

</bundles_post_ra>
